<compile_context>
chip_gen: v6e
topology: v6e:2x2x1
jax: 0.10.0
libtpu: 0.0.40
codegen_flags: <defaults>
</compile_context>

<pallas_src>
import functools

import jax
import jax.numpy as jnp
from jax.experimental import pallas as pl
from jax.experimental.pallas import tpu as pltpu


def _round_up(x: int, m: int) -> int:
    return ((x + m - 1) // m) * m


def _gaussian_net_kernel(x_ref, w_ref, b_ref, out_ref, *,
                         half: int, std_min: float, std_max: float):
    # One fused MXU matmul for both heads, f32 accumulation.
    y = jnp.dot(x_ref[...], w_ref[...], preferred_element_type=jnp.float32)
    y = y + b_ref[...]                                  # [1, N] broadcast over rows

    # Epilogue in f32: lanes [0, half) are the mu head (tanh, EUP slot), lanes
    # [half, 2*half) are the std head (clamp, VPU slot). Padding lanes: don't-care.
    col = jax.lax.broadcasted_iota(jnp.int32, y.shape, 1)
    mu = jnp.tanh(y)
    std = jnp.clip(y, std_min, std_max)
    out_ref[...] = jnp.where(col < half, mu, std).astype(out_ref.dtype)


def prepare_gaussian_net_params(w_mu, b_mu, w_std, b_std,
                                compute_dtype=jnp.float32):
    """Pre-fuse and pre-transpose parameters once (constant for a policy head).

    w_*: [num_outputs, num_inputs] (PyTorch nn.Linear layout), b_*: [num_outputs].
    Returns (w_cat [num_inputs, 2*half], b_cat [1, 2*half] (f32), num_outputs, half).
    """
    num_outputs, num_inputs = w_mu.shape
    half = _round_up(max(num_outputs, 1), 64)           # per-head lane width
    n_pad = 2 * half                                    # multiple of 128 -> lane-dense

    w_cat = jnp.zeros((num_inputs, n_pad), jnp.float32)
    w_cat = w_cat.at[:, :num_outputs].set(jnp.asarray(w_mu, jnp.float32).T)
    w_cat = w_cat.at[:, half:half + num_outputs].set(jnp.asarray(w_std, jnp.float32).T)

    b_cat = jnp.zeros((1, n_pad), jnp.float32)
    b_cat = b_cat.at[0, :num_outputs].set(jnp.asarray(b_mu, jnp.float32))
    b_cat = b_cat.at[0, half:half + num_outputs].set(jnp.asarray(b_std, jnp.float32))

    # Only the MXU operands go to compute_dtype; bias stays f32 for the f32 epilogue.
    return w_cat.astype(compute_dtype), b_cat, num_outputs, half


def gaussian_net_forward(x, w_cat, b_cat, num_outputs: int, half: int,
                         std_min: float = 1e-6, std_max: float = 1.0,
                         batch_tile: int = 2048):
    """x: [B, num_inputs]. Returns (mu, std), each [B, num_outputs], float32."""
    B, num_inputs = x.shape
    n_pad = 2 * half
    compute_dtype = w_cat.dtype
    x = x.astype(compute_dtype)
    x_itemsize = jnp.dtype(compute_dtype).itemsize

    # ---- Row-tile size from a VMEM budget (double-buffered x and out tiles). ----
    per_row_bytes = 2 * num_inputs * x_itemsize + 2 * n_pad * 4
    tile_budget = 24 << 20                                          # bytes for tiles
    tb_cap = max(8, (tile_budget // max(per_row_bytes, 1)) // 8 * 8)
    tb = min(batch_tile, tb_cap, _round_up(B, 8))
    tb = max(8, tb // 8 * 8)

    b_pad = _round_up(B, tb)
    if b_pad != B:
        x = jnp.pad(x, ((0, b_pad - B), (0, 0)))

    resident_bytes = num_inputs * n_pad * x_itemsize + n_pad * 4    # fused W + b
    vmem_need = tb * per_row_bytes + resident_bytes
    vmem_limit = int(min(max(2 * vmem_need, 8 << 20), 32 << 20))

    cost = pl.CostEstimate(
        flops=2 * b_pad * num_inputs * n_pad,
        transcendentals=b_pad * half,
        bytes_accessed=(b_pad * num_inputs * x_itemsize
                        + resident_bytes
                        + b_pad * n_pad * 4),
    )

    kernel = functools.partial(_gaussian_net_kernel, half=half,
                               std_min=float(std_min), std_max=float(std_max))

    out = pl.pallas_call(
        kernel,
        out_shape=jax.ShapeDtypeStruct((b_pad, n_pad), jnp.float32),
        grid_spec=pltpu.PrefetchScalarGridSpec(
            num_scalar_prefetch=0,
            grid=(b_pad // tb,),
            in_specs=[
                pl.BlockSpec((tb, num_inputs), lambda i: (i, 0)),     # x tile (pipelined)
                pl.BlockSpec((num_inputs, n_pad), lambda i: (0, 0)),  # fused W (resident)
                pl.BlockSpec((1, n_pad), lambda i: (0, 0)),           # fused b (resident)
            ],
            out_specs=pl.BlockSpec((tb, n_pad), lambda i: (i, 0)),    # lane-dense slab
        ),
        compiler_params=pltpu.CompilerParams(
            dimension_semantics=("parallel",),
            vmem_limit_bytes=vmem_limit,
        ),
        cost_estimate=cost,
    )(x, w_cat, b_cat)

    mu = out[:B, :num_outputs]
    std = out[:B, half:half + num_outputs]
    return mu, std


def _orthogonal(key, rows, cols, gain):
    """Deterministic orthogonal init (nn.init.orthogonal_ equivalent)."""
    a = jax.random.normal(key, (max(rows, cols), min(rows, cols)), jnp.float32)
    q, r = jnp.linalg.qr(a)
    q = q * jnp.sign(jnp.diagonal(r))
    if rows < cols:
        q = q.T
    return gain * q[:rows, :cols]


def _run_case(key, B, num_inputs, num_outputs, std_min, std_max, batch_tile):
    k_x, k_mu, k_std = jax.random.split(key, 3)
    x = jax.random.normal(k_x, (B, num_inputs), jnp.float32)

    # Parameters (shapes from GaussianNet.__init__): nn.Linear(num_inputs, num_outputs)
    w_mu = _orthogonal(k_mu, num_outputs, num_inputs, gain=0.01)
    b_mu = jnp.zeros((num_outputs,), jnp.float32)
    w_std = _orthogonal(k_std, num_outputs, num_inputs, gain=0.01)
    b_std = jnp.zeros((num_outputs,), jnp.float32)

    # Plain-JAX reference (f32).
    mu_ref = jnp.tanh(x @ w_mu.T + b_mu)
    std_ref = jnp.clip(x @ w_std.T + b_std, std_min, std_max)

    # f32 path (exact check).
    w_cat, b_cat, n_out, half = prepare_gaussian_net_params(
        w_mu, b_mu, w_std, b_std, compute_dtype=jnp.float32)
    mu, std = gaussian_net_forward(x, w_cat, b_cat, n_out, half,
                                   std_min=std_min, std_max=std_max,
                                   batch_tile=batch_tile)
    jax.block_until_ready((mu, std))
    assert mu.shape == (B, num_outputs) and std.shape == (B, num_outputs)
    assert jnp.allclose(mu, mu_ref, atol=1e-5), "mu mismatch (f32)"
    assert jnp.allclose(std, std_ref, atol=1e-5), "std mismatch (f32)"

    # bf16 MXU path (halved x/W DMA bytes; f32 accumulate + f32 epilogue).
    w_cat16, b_cat16, n_out16, half16 = prepare_gaussian_net_params(
        w_mu, b_mu, w_std, b_std, compute_dtype=jnp.bfloat16)
    mu16, std16 = gaussian_net_forward(x, w_cat16, b_cat16, n_out16, half16,
                                       std_min=std_min, std_max=std_max,
                                       batch_tile=batch_tile)
    jax.block_until_ready((mu16, std16))
    assert jnp.allclose(mu16, mu_ref, atol=1e-2), "mu mismatch (bf16)"
    assert jnp.allclose(std16, std_ref, atol=1e-2), "std mismatch (bf16)"


if __name__ == "__main__":
    STD_MIN, STD_MAX = 1e-6, 1.0
    key = jax.random.PRNGKey(0)
    k1, k2 = jax.random.split(key)

    # Small canonical case (matches GaussianNet usage: batch=8, hidden=32, act_dim=8).
    _run_case(k1, B=8, num_inputs=32, num_outputs=8,
              std_min=STD_MIN, std_max=STD_MAX, batch_tile=1024)

    # Ragged case exercising batch padding + multi-step grid pipeline.
    _run_case(k2, B=300, num_inputs=96, num_outputs=5,
              std_min=STD_MIN, std_max=STD_MAX, batch_tile=128)

    print("KERNEL_OK")
</pallas_src>

<mosaic_0001>
module attributes {stable_mosaic.version = 11 : i64} {
  func.func @_gaussian_net_kernel(%arg0: i32, %arg1: memref<8x32xf32, #tpu.memory_space<vmem>>, %arg2: memref<32x128xf32, #tpu.memory_space<vmem>>, %arg3: memref<1x128xf32, #tpu.memory_space<vmem>>, %arg4: memref<8x128xf32, #tpu.memory_space<vmem>>) attributes {dimension_semantics = [#tpu.dimension_semantics<parallel>], iteration_bounds = array<i64: 1>, scalar_prefetch = 0 : i64, scratch_operands = 0 : i64, tpu.core_type = #tpu.core_type<tc>, window_params = [{transform_indices = @transform_0, window_bounds = array<i64: 8, 32>}, {pipeline_mode = #tpu.pipeline_mode<synchronous>, transform_indices = @transform_1, window_bounds = array<i64: 32, 128>}, {pipeline_mode = #tpu.pipeline_mode<synchronous>, transform_indices = @transform_2, window_bounds = array<i64: 1, 128>}, {transform_indices = @transform_3, window_bounds = array<i64: 8, 128>}]} {
    %c0 = arith.constant 0 : index
    %c0_0 = arith.constant 0 : index
    %0 = vector.load %arg1[%c0, %c0_0] : memref<8x32xf32, #tpu.memory_space<vmem>>, vector<8x32xf32>
    %c0_1 = arith.constant 0 : index
    %c0_2 = arith.constant 0 : index
    %1 = vector.load %arg2[%c0_1, %c0_2] : memref<32x128xf32, #tpu.memory_space<vmem>>, vector<32x128xf32>
    %cst = arith.constant dense<0.000000e+00> : vector<8x128xf32>
    %2 = tpu.matmul %0, %1, %cst {dimension_numbers = #tpu.dot_dimension_numbers<[1], [0], [0], [1], [0, 0, 1, 1], [], []>} : vector<8x32xf32>, vector<32x128xf32>, vector<8x128xf32> -> vector<8x128xf32>
    %c0_3 = arith.constant 0 : index
    %c0_4 = arith.constant 0 : index
    %3 = vector.load %arg3[%c0_3, %c0_4] : memref<1x128xf32, #tpu.memory_space<vmem>>, vector<1x128xf32>
    %4 = vector.broadcast %3 : vector<1x128xf32> to vector<8x128xf32>
    %5 = arith.addf %2, %4 : vector<8x128xf32>
    %6 = tpu.iota {dimensions = array<i32: 1>} : vector<8x128xi32>
    %7 = math.tanh %5 : vector<8x128xf32>
    %cst_5 = arith.constant 9.99999997E-7 : f32
    %cst_6 = arith.constant 1.000000e+00 : f32
    %8 = vector.broadcast %cst_5 : f32 to vector<8x128xf32>
    %9 = arith.maximumf %8, %5 : vector<8x128xf32>
    %10 = vector.broadcast %cst_6 : f32 to vector<8x128xf32>
    %11 = arith.minimumf %10, %9 : vector<8x128xf32>
    %c64_i32 = arith.constant 64 : i32
    %12 = vector.broadcast %c64_i32 : i32 to vector<8x128xi32>
    %13 = arith.cmpi slt, %6, %12 : vector<8x128xi32>
    %14 = arith.select %13, %7, %11 : vector<8x128xi1>, vector<8x128xf32>
    %c0_7 = arith.constant 0 : index
    %c0_8 = arith.constant 0 : index
    %15 = vector.load %arg4[%c0_7, %c0_8] : memref<8x128xf32, #tpu.memory_space<vmem>>, vector<8x128xf32>
    tpu.vector_store %arg4[%c0_7, %c0_8], %14 {strides = array<i32>} : memref<8x128xf32, #tpu.memory_space<vmem>>, vector<8x128xf32>,
    return
  }
  func.func @transform_0(%arg0: i32) -> (i32, i32) {
    %c0_i32 = arith.constant 0 : i32
    %c0_i32_0 = arith.constant 0 : i32
    return %arg0, %c0_i32 : i32, i32
  }
  func.func @transform_1(%arg0: i32) -> (i32, i32) {
    %c0_i32 = arith.constant 0 : i32
    %c0_i32_0 = arith.constant 0 : i32
    %c0_i32_1 = arith.constant 0 : i32
    return %c0_i32, %c0_i32_0 : i32, i32
  }
  func.func @transform_2(%arg0: i32) -> (i32, i32) {
    %c0_i32 = arith.constant 0 : i32
    %c0_i32_0 = arith.constant 0 : i32
    %c0_i32_1 = arith.constant 0 : i32
    return %c0_i32, %c0_i32_0 : i32, i32
  }
  func.func @transform_3(%arg0: i32) -> (i32, i32) {
    %c0_i32 = arith.constant 0 : i32
    %c0_i32_0 = arith.constant 0 : i32
    return %arg0, %c0_i32 : i32, i32
  }
}

</mosaic_0001>

<bundles_post_ra>
// kernel: tpu_custom_call.1
= control target key start
LH: loop header
LB: loop body
LE: loop exit
PB: predicated region body
PF: predicated region fallthrough
CT: control target
= control target key end

     0   :  { %8 = vsyncpa [#allocation3], 0  ;;  %s283_s0 = inlined_call_operand.hbm [shape: f32[8,32], index: 0, kind: input, shape index: {}]   ;;  %s284_s1 = inlined_call_operand.hbm [shape: f32[32,128], index: 1, kind: input, shape index: {}]   ;;  %s285_s2 = inlined_call_operand.vmem [shape: f32[1,128], index: 2, kind: input, shape index: {}]   ;;  %s286_s3 = inlined_call_operand.hbm [shape: f32[8,128], index: 3, kind: output, shape index: {}]  }
   0x1   :  { %9 = vsyncpa [#allocation6], 0 }
   0x2   :  { %10 = vsyncpa [#allocation4], 0  ;;  %s244_s12 = smov [#allocation2]   ;;  %s245_s14 = smov [#allocation5]  }
   0x3   :  { %s17_s13 = sshll.u32 %s244_s12, 4  ;;  %s26_s15 = sshll.u32 %s245_s14, 4  ;;  %s18_s13 = int_to_ptr.vmem [resolvable:$true] %s17_s13  ;;  %s27_s15 = int_to_ptr.vmem [resolvable:$true] %s26_s15 }
   0x4   :  { %s186_s16 = scalar_lea.vmem %s18_s13, 128  ;;  %p191_p1 = scmp.lt.s32.totalorder %s18_s13, %s18_s13 }
   0x5   :  { %p187_p0 = scmp.ne.s32.totalorder %s18_s13, %s186_s16  ;;  %p192_p2 = scmp.lt.s32.totalorder %s186_s16, %s186_s16 }
   0x7   :  { %p193_p3 = por %p192_p2, %p191_p1 }
   0x9   :  { %p194_p4 = pnand %p193_p3, %p187_p0 }
   0xb   :  { %197 = shalt.err (!%p194_p4)
}
   0xc   :  { %20 = dma.hbm_to_vmem [thread:$0]  %s283_s0, 128, %s18_s13, [#allocation3]  }
   0xd   :  { %s206_s19 = scalar_lea.vmem %s27_s15, 512  ;;  %p211_p6 = scmp.lt.s32.totalorder %s27_s15, %s27_s15 }
   0xe   :  { %p207_p5 = scmp.ne.s32.totalorder %s27_s15, %s206_s19  ;;  %p212_p7 = scmp.lt.s32.totalorder %s206_s19, %s206_s19 }
  0x10   :  { %p213_p8 = por %p212_p7, %p211_p6 }
  0x12   :  { %p214_p9 = pnand %p213_p8, %p207_p5 }
  0x14   :  { %217 = shalt.err (!%p214_p9)
}
  0x15   :  { %s246_s20 = smov 128   ;;  %s247_s21 = smov 8  }
  0x16   :  { %32 = dma.hbm_to_vmem [thread:$0]  %s284_s1, 512, %s27_s15, [#allocation6], %s246_s20, %s246_s20, %s247_s21  }
  0x17   :  { %238 = dma.done.wait [#allocation3], 128  }
  0x18   :  { %239 = vsyncadd [#allocation3], 4294967168 }
  0x19   :  { %240 = dma.done.wait [#allocation6], 512  }
  0x1a   :  { %241 = vsyncadd [#allocation6], 4294966784  ;;  %v248_v0 = vmov 0.0   ;;  %vm249_vm0 = vmmov 0   ;;  %v45_v1 = vld [vmem:[#allocation5 + $0x18] sm:$0xff]  ;;  %v44_v2 = vld [vmem:[#allocation5 + $0x10] sm:$0xff]  ;;  %v127_v10 = vlaneseq }
  0x1b   :  { %158 = vmatprep.subr.mxu0 %v248_v0  ;;  %166 = vmatprep.mubr.msk.f32.mxu0 %vm249_vm0, %v248_v0  ;;  %v43_v3 = vld [vmem:[#allocation5 + $0x8] sm:$0xff]  ;;  %v42_v4 = vld [vmem:[#allocation5] sm:$0xff]  ;;  %v41_v5 = vld [vmem:[#allocation2] sm:$0xff]  ;;  %vm53_vm1 = vcmask 261120   ;;  %s250_s24 = smov [#allocation7]  }
  0x1c   :  { %159 = vmatpush3.msra.mxu0 %v45_v1  ;;  %v151_v6 = vld [vmem:[%s285_s2] ss:$0 sm:$0xff]  ;;  %v128_v11 = vand.u32 127, %v127_v10  ;;  %s141_s25 = sshll.u32 %s250_s24, 4  ;;  %s142_s25 = int_to_ptr.vmem [resolvable:$true] %s141_s25 }
  0x1d   :  { %160 = vmatprep.subr.mxu0 %v248_v0  ;;  %s218_s26 = scalar_lea.vmem %s142_s25, 128  ;;  %p223_p11 = scmp.lt.s32.totalorder %s142_s25, %s142_s25 }
  0x1e   :  { %161 = vmatpush3.msra.mxu0 %v44_v2  ;;  %vm132_vm2 = vcmp.lt.s32.totalorder %v128_v11, 64  ;;  %p219_p10 = scmp.ne.s32.totalorder %s142_s25, %s218_s26  ;;  %p224_p12 = scmp.lt.s32.totalorder %s218_s26, %s218_s26 }
  0x1f   :  { %162 = vmatprep.subr.mxu0 %v248_v0 }
  0x20   :  { %163 = vmatpush3.msra.mxu0 %v43_v3  ;;  %p225_p13 = por %p224_p12, %p223_p11 }
  0x21   :  { %164 = vmatprep.subr.mxu0 %v248_v0 }
  0x22   :  { %165 = vmatpush3.msra.mxu0 %v42_v4  ;;  %p226_p0 = pnand %p225_p13, %p219_p10 }
  0x23   :  { %167 = vmatmul.mubr.msk.f32.vlgmr.msra.gmra.mxu0 %vm53_vm1, %v41_v5 }
  0xe3   :  { %v123_v7 = vpop.f32.mrf.mxu0 }
  0xe4   :  { %v124_v8 = vadd.f32 %v151_v6, %v123_v7 }
  0xe5   :  { %v168_v9 = vpop.f32.mrf.mxu0 }
  0xe6   :  { %176 = vtanh.f32 %v124_v8  ;;  %v130_v12 = vmax.f32 %v124_v8, 1e-06 }
  0xe8   :  { %v131_v13 = vmin.f32 %v130_v12, 1.0 }
  0xf3   :  { %v177_v14 = vpop.eup %176 }
  0xf4   :  { %v133_v15 = vsel %vm132_vm2, %v177_v14, %v131_v13 }
  0xf5   :  { %134 = vst [vmem:[#allocation7] sm:$0xff] %v133_v15 }
  0xf6   :  { %229 = shalt.err (!%p226_p0)
}
  0xf7   :  { %144 = dma.vmem_to_hbm [thread:$0]  %s142_s25, 128, %s286_s3, [#allocation4]  }
  0xf8   :  { %242 = dma.done.wait [#allocation4], 128  }
  0xf9   :  { %243 = vsyncadd [#allocation4], 4294967168 }
  0xfa   :  { %148 = vsyncpa [#allocation3], 1 }
  0xfb   :  { %149 = vsyncpa [#allocation6], 1 }
  0xfc   :  { %150 = vsyncpa [#allocation4], 1 }

</bundles_post_ra>
